<compile_context>
chip_gen: v7x
topology: tpu7x:2x2x1
jax: 0.10.0
libtpu: 0.0.40
codegen_flags: <defaults>
</compile_context>

<pallas_src>
import jax
import jax.numpy as jnp
from jax.experimental import pallas as pl
from jax.experimental.pallas import tpu as pltpu


def _weighted_sq_kernel(x_ref, y_ref, w_ref, out_ref):
    # x_ref, y_ref: (Cblk, HW) slabs; w_ref: (1, HW) weight row; out_ref: (1, 1) f32.
    i = pl.program_id(0)

    @pl.when(i == 0)
    def _():
        out_ref[...] = jnp.zeros_like(out_ref)

    d = x_ref[...].astype(jnp.float32) - y_ref[...].astype(jnp.float32)
    weighted = d * d * w_ref[...]            # (Cblk, HW) * (1, HW) broadcast
    out_ref[...] += jnp.sum(weighted)        # resident scalar accumulator


def _make_weight_2d(p, H, W):
    """N_2d = outer(C1, L1), identical to the PyTorch __init__ construction."""
    c1 = jnp.concatenate([
        jnp.arange(1, p + 1, dtype=jnp.float32),
        p * jnp.ones(H - 2 * p, dtype=jnp.float32),
        jnp.arange(p, 0, -1, dtype=jnp.float32),
    ])
    l1 = jnp.concatenate([
        jnp.arange(1, p + 1, dtype=jnp.float32),
        p * jnp.ones(W - 2 * p, dtype=jnp.float32),
        jnp.arange(p, 0, -1, dtype=jnp.float32),
    ])
    return jnp.outer(c1, l1)                 # (H, W)


def _weighted_sq_sum(x, y, n2d, *, block_budget_bytes=2 * 1024 * 1024):
    """Pallas reduction: sum(n2d * (x - y)^2) over all of (B, C, H, W)."""
    B, C, H, W = x.shape
    BC, HW = B * C, H * W

    xf = x.reshape(BC, HW)
    yf = y.reshape(BC, HW)
    wf = n2d.reshape(1, HW).astype(jnp.float32)

    # Largest (Cblk, HW) block under a per-input VMEM budget (double-buffered
    # by the pipeline; stays well inside v7x's smaller scoped VMEM too).
    bytes_per_row = HW * max(x.dtype.itemsize, 4)
    cblk = max(1, block_budget_bytes // bytes_per_row)
    if cblk >= BC:
        cblk = BC                            # full dim -> no (8,) constraint
    else:
        cblk = max(8, (cblk // 8) * 8)       # keep sublane-aligned block dim
    bc_pad = -(-BC // cblk) * cblk
    if bc_pad != BC:
        pad = bc_pad - BC
        xf = jnp.pad(xf, ((0, pad), (0, 0)))  # zero diff -> zero contribution
        yf = jnp.pad(yf, ((0, pad), (0, 0)))
    num_blocks = bc_pad // cblk

    out = pl.pallas_call(
        _weighted_sq_kernel,
        out_shape=jax.ShapeDtypeStruct((1, 1), jnp.float32),
        grid_spec=pltpu.PrefetchScalarGridSpec(
            num_scalar_prefetch=0,
            grid=(num_blocks,),
            in_specs=[
                pl.BlockSpec((cblk, HW), lambda i: (i, 0)),
                pl.BlockSpec((cblk, HW), lambda i: (i, 0)),
                pl.BlockSpec((1, HW), lambda i: (0, 0)),
            ],
            out_specs=pl.BlockSpec((1, 1), lambda i: (0, 0)),
        ),
        compiler_params=pltpu.CompilerParams(
            dimension_semantics=("arbitrary",),   # reduction axis (accumulator)
            vmem_limit_bytes=64 * 1024 * 1024,
        ),
        cost_estimate=pl.CostEstimate(
            flops=4 * bc_pad * HW,
            transcendentals=0,
            bytes_accessed=(xf.size * xf.dtype.itemsize
                            + yf.size * yf.dtype.itemsize
                            + wf.size * 4 + 4),
        ),
    )(xf, yf, wf)
    return out[0, 0]


def weighted_l2(x, y, p, *, square=True):
    """Pallas equivalent of WeightedL2(p, x.shape)(x, y) with k=None."""
    _, _, H, W = x.shape
    n2d = _make_weight_2d(int(p), H, W)
    wss = _weighted_sq_sum(x, y, n2d)
    l22 = wss / jnp.sum(n2d)
    return l22 if square else jnp.sqrt(l22)


if __name__ == "__main__":
    key = jax.random.PRNGKey(0)
    kx, ky = jax.random.split(key)

    B, C, H, W = 2, 4, 16, 16
    p = 4
    x = jax.random.normal(kx, (B, C, H, W), dtype=jnp.float32)
    y = jax.random.normal(ky, (B, C, H, W), dtype=jnp.float32)

    out = jax.block_until_ready(weighted_l2(x, y, p))

    # Pure-JAX reference (same formula as the PyTorch module's forward).
    n2d = _make_weight_2d(p, H, W)
    ref = jnp.sum(n2d[None, None, :, :] * (x - y) ** 2) / jnp.sum(n2d)
    assert jnp.allclose(out, ref, rtol=1e-5, atol=1e-5), (float(out), float(ref))

    out_sqrt = jax.block_until_ready(weighted_l2(x, y, p, square=False))
    assert jnp.allclose(out_sqrt, jnp.sqrt(ref), rtol=1e-5, atol=1e-5), (
        float(out_sqrt), float(jnp.sqrt(ref)))

    print("KERNEL_OK")
</pallas_src>

<mosaic_0001>
module attributes {stable_mosaic.version = 11 : i64} {
  func.func @_weighted_sq_kernel(%arg0: i32, %arg1: memref<8x256xf32, #tpu.memory_space<vmem>>, %arg2: memref<8x256xf32, #tpu.memory_space<vmem>>, %arg3: memref<1x256xf32, #tpu.memory_space<vmem>>, %arg4: memref<1x1xf32, #tpu.memory_space<vmem>>) attributes {dimension_semantics = [#tpu.dimension_semantics<arbitrary>], iteration_bounds = array<i64: 1>, scalar_prefetch = 0 : i64, scratch_operands = 0 : i64, tpu.core_type = #tpu.core_type<tc>, window_params = [{transform_indices = @transform_0, window_bounds = array<i64: 8, 256>}, {transform_indices = @transform_1, window_bounds = array<i64: 8, 256>}, {pipeline_mode = #tpu.pipeline_mode<synchronous>, transform_indices = @transform_2, window_bounds = array<i64: 1, 256>}, {pipeline_mode = #tpu.pipeline_mode<synchronous>, transform_indices = @transform_3, window_bounds = array<i64: 1, 1>}]} {
    %c0_i32 = arith.constant 0 : i32
    %0 = arith.cmpi eq, %arg0, %c0_i32 : i32
    %1 = arith.extui %0 : i1 to i32
    %c0_i32_0 = arith.constant 0 : i32
    %2 = arith.cmpi ne, %1, %c0_i32_0 : i32
    scf.if %2 {
      %cst_10 = arith.constant 0.000000e+00 : f32
      %18 = vector.broadcast %cst_10 : f32 to vector<1x1xf32>
      %c0_11 = arith.constant 0 : index
      %c0_12 = arith.constant 0 : index
      %19 = vector.load %arg4[%c0_11, %c0_12] : memref<1x1xf32, #tpu.memory_space<vmem>>, vector<1x1xf32>
      tpu.vector_store %arg4[%c0_11, %c0_12], %18 {strides = array<i32>} : memref<1x1xf32, #tpu.memory_space<vmem>>, vector<1x1xf32>,
    } else {
    }
    %c0 = arith.constant 0 : index
    %c0_1 = arith.constant 0 : index
    %3 = vector.load %arg1[%c0, %c0_1] : memref<8x256xf32, #tpu.memory_space<vmem>>, vector<8x256xf32>
    %c0_2 = arith.constant 0 : index
    %c0_3 = arith.constant 0 : index
    %4 = vector.load %arg2[%c0_2, %c0_3] : memref<8x256xf32, #tpu.memory_space<vmem>>, vector<8x256xf32>
    %5 = arith.subf %3, %4 : vector<8x256xf32>
    %6 = arith.mulf %5, %5 : vector<8x256xf32>
    %c0_4 = arith.constant 0 : index
    %c0_5 = arith.constant 0 : index
    %7 = vector.load %arg3[%c0_4, %c0_5] : memref<1x256xf32, #tpu.memory_space<vmem>>, vector<1x256xf32>
    %8 = vector.broadcast %7 : vector<1x256xf32> to vector<8x256xf32>
    %9 = arith.mulf %6, %8 : vector<8x256xf32>
    %c0_6 = arith.constant 0 : index
    %c0_7 = arith.constant 0 : index
    %10 = vector.load %arg4[%c0_6, %c0_7] : memref<1x1xf32, #tpu.memory_space<vmem>>, vector<1x1xf32>
    %11 = vector.shape_cast %9 : vector<8x256xf32> to vector<1x8x256xf32>
    %cst = arith.constant dense<0.000000e+00> : vector<1xf32>
    %12 = vector.multi_reduction <add>, %11, %cst [1, 2] : vector<1x8x256xf32> to vector<1xf32>
    %13 = vector.shape_cast %12 : vector<1xf32> to vector<1x1x1xf32>
    %14 = vector.extract %13[0, 0, 0] : f32 from vector<1x1x1xf32>
    %15 = vector.broadcast %14 : f32 to vector<1x1xf32>
    %16 = arith.addf %10, %15 : vector<1x1xf32>
    %c0_8 = arith.constant 0 : index
    %c0_9 = arith.constant 0 : index
    %17 = vector.load %arg4[%c0_8, %c0_9] : memref<1x1xf32, #tpu.memory_space<vmem>>, vector<1x1xf32>
    tpu.vector_store %arg4[%c0_8, %c0_9], %16 {strides = array<i32>} : memref<1x1xf32, #tpu.memory_space<vmem>>, vector<1x1xf32>,
    return
  }
  func.func @transform_0(%arg0: i32) -> (i32, i32) {
    %c0_i32 = arith.constant 0 : i32
    %c0_i32_0 = arith.constant 0 : i32
    return %arg0, %c0_i32 : i32, i32
  }
  func.func @transform_1(%arg0: i32) -> (i32, i32) {
    %c0_i32 = arith.constant 0 : i32
    %c0_i32_0 = arith.constant 0 : i32
    return %arg0, %c0_i32 : i32, i32
  }
  func.func @transform_2(%arg0: i32) -> (i32, i32) {
    %c0_i32 = arith.constant 0 : i32
    %c0_i32_0 = arith.constant 0 : i32
    %c0_i32_1 = arith.constant 0 : i32
    return %c0_i32, %c0_i32_0 : i32, i32
  }
  func.func @transform_3(%arg0: i32) -> (i32, i32) {
    %c0_i32 = arith.constant 0 : i32
    %c0_i32_0 = arith.constant 0 : i32
    %c0_i32_1 = arith.constant 0 : i32
    return %c0_i32, %c0_i32_0 : i32, i32
  }
}

</mosaic_0001>

<bundles_post_ra>
// kernel: tpu_custom_call.1
= control target key start
LH: loop header
LB: loop body
LE: loop exit
PB: predicated region body
PF: predicated region fallthrough
CT: control target
= control target key end

     0   :  { %8 = vsyncpa [#allocation3], 0  ;;  %s285_s0 = inlined_call_operand.hbm [shape: f32[8,256], index: 0, kind: input, shape index: {}]   ;;  %s286_s1 = inlined_call_operand.hbm [shape: f32[8,256], index: 1, kind: input, shape index: {}]   ;;  %s287_s2 = inlined_call_operand.hbm [shape: f32[1,256], index: 2, kind: input, shape index: {}]   ;;  %s288_s3 = inlined_call_operand.hbm [shape: f32[1,1], index: 3, kind: output, shape index: {}]  }
   0x1   :  { %9 = vsyncpa [#allocation6], 0 }
   0x2   :  { %10 = vsyncpa [#allocation4], 0  ;;  %s210_s12 = smov [#allocation5]   ;;  %s211_s14 = smov [#allocation2]  }
   0x3   :  { %s27_s13 = sshll.u32 %s210_s12, 4  ;;  %s17_s15 = sshll.u32 %s211_s14, 4  ;;  %s28_s13 = int_to_ptr.vmem [resolvable:$true] %s27_s13  ;;  %s18_s15 = int_to_ptr.vmem [resolvable:$true] %s17_s15 }
   0x4   :  { %s116_s18 = scalar_lea.hbm %s286_s1, 256 }
   0x5   :  { %p117_p0 = scmp.ne.s32.totalorder %s286_s1, %s116_s18  ;;  %p120_p1 = scmp.lt.u32.totalorder %s116_s18, %s286_s1 }
   0x7   :  { %p122_p2 = pnand %p120_p1, %p117_p0 }
   0x9   :  { %125 = shalt.err (!%p122_p2)
}
   0xa   :  { %s126_s23 = scalar_lea.vmem %s28_s13, 256  ;;  %p131_p4 = scmp.lt.s32.totalorder %s28_s13, %s28_s13 }
   0xb   :  { %p127_p3 = scmp.ne.s32.totalorder %s28_s13, %s126_s23  ;;  %p132_p5 = scmp.lt.s32.totalorder %s126_s23, %s126_s23 }
   0xd   :  { %p133_p6 = por %p132_p5, %p131_p4 }
   0xf   :  { %p134_p7 = pnand %p133_p6, %p127_p3 }
  0x11   :  { %137 = shalt.err (!%p134_p7)
}
  0x12   :  { %30 = dma.hbm_to_vmem [thread:$0]  %s286_s1, 256, %s28_s13, [#allocation6]  }
  0x13   :  { %s138_s28 = scalar_lea.hbm %s285_s0, 256 }
  0x14   :  { %p139_p8 = scmp.ne.s32.totalorder %s285_s0, %s138_s28  ;;  %p142_p9 = scmp.lt.u32.totalorder %s138_s28, %s285_s0 }
  0x16   :  { %p144_p10 = pnand %p142_p9, %p139_p8 }
  0x18   :  { %147 = shalt.err (!%p144_p10)
}
  0x19   :  { %s148_s6 = scalar_lea.vmem %s18_s15, 256  ;;  %p153_p12 = scmp.lt.s32.totalorder %s18_s15, %s18_s15 }
  0x1a   :  { %p149_p11 = scmp.ne.s32.totalorder %s18_s15, %s148_s6  ;;  %p154_p13 = scmp.lt.s32.totalorder %s148_s6, %s148_s6 }
  0x1c   :  { %p155_p0 = por %p154_p13, %p153_p12 }
  0x1e   :  { %p156_p1 = pnand %p155_p0, %p149_p11 }
  0x20   :  { %159 = shalt.err (!%p156_p1)
}
  0x21   :  { %20 = dma.hbm_to_vmem [thread:$0]  %s285_s0, 256, %s18_s15, [#allocation3]  }
  0x22   :  { %s212_s8 = smov [#allocation7]   ;;  %s160_s12 = scalar_lea.hbm %s287_s2, 32 }
  0x23   :  { %s37_s9 = sshll.u32 %s212_s8, 4  ;;  %p161_p2 = scmp.ne.s32.totalorder %s287_s2, %s160_s12  ;;  %s38_s9 = int_to_ptr.vmem [resolvable:$true] %s37_s9 }
  0x24   :  { %p164_p3 = scmp.lt.u32.totalorder %s160_s12, %s287_s2 }
  0x26   :  { %p166_p4 = pnand %p164_p3, %p161_p2 }
  0x28   :  { %169 = shalt.err (!%p166_p4)
}
  0x29   :  { %s170_s18 = scalar_lea.vmem %s38_s9, 32  ;;  %p175_p6 = scmp.lt.s32.totalorder %s38_s9, %s38_s9 }
  0x2a   :  { %p171_p5 = scmp.ne.s32.totalorder %s38_s9, %s170_s18  ;;  %p176_p7 = scmp.lt.s32.totalorder %s170_s18, %s170_s18 }
  0x2c   :  { %p177_p8 = por %p176_p7, %p175_p6 }
  0x2e   :  { %p178_p9 = pnand %p177_p8, %p171_p5 }
  0x30   :  { %181 = shalt.err (!%p178_p9)
}
  0x31   :  { %40 = dma.hbm_to_vmem [thread:$0]  %s287_s2, 32, %s38_s9, [#allocation6]  }
  0x32   :  { %204 = dma.done.wait [#allocation3], 256  }
  0x33   :  { %205 = vsyncadd [#allocation3], 4294967040 }
  0x34   :  { %206 = dma.done.wait [#allocation6], 288  }
  0x35   :  { %207 = vsyncadd [#allocation6], 4294967008  ;;  %vm54_vm0 = vcmask 0   ;;  %v66_v0 = vlaneseq  ;;  %v213_v1 = vmov 0.0   ;;  %v56_v5 = vld [vmem:[#allocation2] sm:$0xff]  ;;  %v57_v6 = vld [vmem:[#allocation2 + $0x8] sm:$0xff] }
  0x36   :  { %55 = vst.msk [vmem:[#allocation8] sm:$0x1] %vm54_vm0, %v213_v1  ;;  %v58_v7 = vld [vmem:[#allocation5] sm:$0xff]  ;;  %v59_v8 = vld [vmem:[#allocation5 + $0x8] sm:$0xff]  ;;  %v64_v10 = vld [vmem:[#allocation7] sm:$0x3] }
  0x37   :  { %v67_v2 = vshrl.u32 %v66_v0, 7  ;;  %v60_v9 = vsub.f32 %v56_v5, %v58_v7  ;;  %v61_v11 = vsub.f32 %v57_v6, %v59_v8  ;;  %s214_s2 = smov [#allocation8]  }
  0x38   :  { %s99_s19 = sshll.u32 %s214_s2, 4  ;;  %s100_s19 = int_to_ptr.vmem [resolvable:$true] %s99_s19 }
  0x39   :  { %v68_v3 = vsub.s32 0, %v67_v2  ;;  %v72_v4 = vsub.s32 1, %v67_v2  ;;  %v62_v14 = vmul.f32 %v60_v9, %v60_v9  ;;  %v63_v15 = vmul.f32 %v61_v11, %v61_v11  ;;  %s182_s21 = scalar_lea.vmem %s100_s19, 16  ;;  %s186_s22 = scalar_lea.vmem %s100_s19, 32 }
  0x3a   :  { %p183_p10 = scmp.ne.s32.totalorder %s100_s19, %s182_s21  ;;  %p187_p11 = scmp.lt.s32.totalorder %s100_s19, %s100_s19 }
  0x3b   :  { %v69_v12 = vrot.slane %v64_v10, %v68_v3  ;;  %v73_v13 = vrot.slane %v64_v10, %v72_v4  ;;  %p188_p12 = scmp.lt.s32.totalorder %s186_s22, %s182_s21 }
  0x3d   :  { %v76_v16 = vmul.f32 %v69_v12, %v62_v14  ;;  %v77_v17 = vmul.f32 %v73_v13, %v63_v15  ;;  %v78_v26 = vld [vmem:[#allocation8] sm:$0x1]  ;;  %p189_p13 = por %p188_p12, %p187_p11 }
  0x3f   :  { %v79_v18 = vadd.f32 %v77_v17, %v76_v16  ;;  %p190_p0 = pnand %p189_p13, %p183_p10 }
  0x41   :  { %80 = vadd.xlane.f32.xlu0 %v79_v18 }
  0xce   :  { %v81_v19 = vpop.xlane.xlu0 %80 }
  0xcf   :  { %v82_v20 = vrot.slane %v81_v19, 4 }
  0xd1   :  { %v83_v21 = vadd.f32 %v82_v20, %v81_v19 }
  0xd3   :  { %v84_v22 = vrot.slane %v83_v21, 2 }
  0xd5   :  { %v85_v23 = vadd.f32 %v84_v22, %v83_v21 }
  0xd7   :  { %v86_v24 = vrot.slane %v85_v23, 1 }
  0xd9   :  { %v87_v25 = vadd.f32 %v86_v24, %v85_v23 }
  0xdb   :  { %109 = vpush %v87_v25 }
 0x10c   :  { %s110_s20 = spop %109 }
 0x10d   :  { %v89_v27 = vstv %s110_s20 }
 0x10e   :  { %v90_v28 = vadd.f32 %v89_v27, %v78_v26 }
 0x110   :  { %92 = vst.msk [vmem:[#allocation8] sm:$0x1] %vm54_vm0, %v90_v28 }
 0x111   :  { %193 = shalt.err (!%p190_p0)
}
 0x112   :  { %s194_s25 = scalar_lea.hbm %s288_s3, 16 }
 0x113   :  { %p195_p1 = scmp.ne.s32.totalorder %s288_s3, %s194_s25  ;;  %p198_p2 = scmp.lt.u32.totalorder %s194_s25, %s288_s3 }
 0x115   :  { %p200_p3 = pnand %p198_p2, %p195_p1 }
 0x117   :  { %203 = shalt.err (!%p200_p3)
}
 0x118   :  { %102 = dma.vmem_to_hbm [thread:$0]  %s100_s19, 16, %s288_s3, [#allocation4]  }
 0x119   :  { %208 = dma.done.wait [#allocation4], 16  }
 0x11a   :  { %209 = vsyncadd [#allocation4], 4294967280 }
 0x11b   :  { %106 = vsyncpa [#allocation3], 1 }
 0x11c   :  { %107 = vsyncpa [#allocation6], 1 }
 0x11d   :  { %108 = vsyncpa [#allocation4], 1 }

</bundles_post_ra>
